<compile_context>
chip_gen: v7x
topology: tpu7x:2x2x1
jax: 0.10.0
libtpu: 0.0.40
codegen_flags: <defaults>
</compile_context>

<pallas_src>
import jax
import jax.numpy as jnp
from jax.experimental import pallas as pl
from jax.experimental.pallas import tpu as pltpu


def _round_up(v, m):
    return ((v + m - 1) // m) * m


def mlp_kernel(x_ref, w1_ref, b1_ref, w2_ref, b2_ref, w3_ref, b3_ref,
               w4_ref, b4_ref, o_ref):
    # Whole 3-hidden-layer MLP fused per batch tile, f32 throughout.
    # TODO(synk): nn.Dropout(0.25) is identity in eval mode; training-mode dropout
    # (pltpu.prng_* + mask) is intentionally not implemented here.
    x = x_ref[...]                                                       # (tile_b, in) f32

    h = jnp.dot(x, w1_ref[...], preferred_element_type=jnp.float32) + b1_ref[...]
    h = jnp.maximum(h, 0.0)

    h = jnp.dot(h, w2_ref[...], preferred_element_type=jnp.float32) + b2_ref[...]
    h = jnp.maximum(h, 0.0)

    h = jnp.dot(h, w3_ref[...], preferred_element_type=jnp.float32) + b3_ref[...]
    h = jnp.maximum(h, 0.0)

    y = jnp.dot(h, w4_ref[...], preferred_element_type=jnp.float32) + b4_ref[...]
    o_ref[...] = y.astype(o_ref.dtype)                                   # (tile_b, out) store


def prepare_params(params):
    """One-time parameter prep (do NOT redo per forward call):
    transpose PyTorch (out, in) -> (in, out); keep f32 (weights are tiny, accuracy
    matters more than the few KB of HBM they cost)."""
    hid = params["w1"].shape[0]
    out_nodes = params["w4"].shape[0]
    return dict(
        w1=params["w1"].T.astype(jnp.float32),
        w2=params["w2"].T.astype(jnp.float32),
        w3=params["w3"].T.astype(jnp.float32),
        w4=params["w4"].T.astype(jnp.float32),
        b1=params["b1"].reshape(1, hid).astype(jnp.float32),
        b2=params["b2"].reshape(1, hid).astype(jnp.float32),
        b3=params["b3"].reshape(1, hid).astype(jnp.float32),
        b4=params["b4"].reshape(1, out_nodes).astype(jnp.float32),
        hid=hid, out_nodes=out_nodes,
    )


def learn_kappa_layers3_forward(x, prepped, *, tile_b=None, max_tile=2048):
    """x: (B, In_nodes) f32; prepped: output of prepare_params."""
    B, in_nodes = x.shape
    hid = prepped["hid"]
    out_nodes = prepped["out_nodes"]

    # Batch tile selection:
    #  * up to `max_tile` rows per step (amortizes the ~0.35us/step overhead; f32
    #    (tile_b,128-lane) blocks stay well inside default scoped VMEM everywhere),
    #  * balanced across steps (tile_b ~= B/n_steps) to avoid ~2x padded work when
    #    B is just over a multiple of max_tile,
    #  * >= 2 steps when B is large enough so the "parallel" axis uses both v7x TCs,
    #  * multiple of 16 rows (sublane alignment).
    if tile_b is None:
        n_steps = pl.cdiv(B, max_tile)
        if n_steps == 1 and B >= 256:       # split moderate/large B across 2 TCs (v7x)
            n_steps = 2
        tile_b = _round_up(pl.cdiv(B, n_steps), 16)
    n_steps = pl.cdiv(B, tile_b)
    B_pad = n_steps * tile_b

    x_p = x if B_pad == B else jnp.pad(x, ((0, B_pad - B), (0, 0)))

    full = lambda shape: pl.BlockSpec(shape, lambda i: (0, 0))   # resident weights/biases

    flops = 2 * B_pad * (in_nodes * hid + 2 * hid * hid + hid * out_nodes)
    bytes_accessed = 4 * (
        B_pad * in_nodes                                       # x (f32 read)
        + B_pad * out_nodes                                    # y (f32 write)
        + in_nodes * hid + 2 * hid * hid + hid * out_nodes     # f32 weights
        + 3 * hid + out_nodes                                  # f32 biases
    )

    y_pad = pl.pallas_call(
        mlp_kernel,
        out_shape=jax.ShapeDtypeStruct((B_pad, out_nodes), jnp.float32),
        grid_spec=pltpu.PrefetchScalarGridSpec(
            num_scalar_prefetch=0,
            grid=(n_steps,),
            in_specs=[
                pl.BlockSpec((tile_b, in_nodes), lambda i: (i, 0)),   # x tile
                full((in_nodes, hid)), full((1, hid)),                # layer 1
                full((hid, hid)), full((1, hid)),                     # layer 2
                full((hid, hid)), full((1, hid)),                     # layer 3
                full((hid, out_nodes)), full((1, out_nodes)),         # layer 4 (unpadded)
            ],
            out_specs=pl.BlockSpec((tile_b, out_nodes), lambda i: (i, 0)),
        ),
        compiler_params=pltpu.CompilerParams(
            dimension_semantics=("parallel",)),
        cost_estimate=pl.CostEstimate(
            flops=flops, transcendentals=0, bytes_accessed=bytes_accessed),
    )(x_p, prepped["w1"], prepped["b1"], prepped["w2"], prepped["b2"],
      prepped["w3"], prepped["b3"], prepped["w4"], prepped["b4"])

    # Row-slice only if the batch was padded (columns are never padded anymore).
    return y_pad if B_pad == B else y_pad[:B]


def init_params(key, in_nodes, hid, out_nodes):
    """Deterministic init mimicking nn.Linear default (uniform +/- 1/sqrt(fan_in))."""
    ks = jax.random.split(key, 8)

    def lin(kw, kb, fan_in, fan_out):
        bound = 1.0 / jnp.sqrt(fan_in)
        w = jax.random.uniform(kw, (fan_out, fan_in), jnp.float32, -bound, bound)
        b = jax.random.uniform(kb, (fan_out,), jnp.float32, -bound, bound)
        return w, b

    w1, b1 = lin(ks[0], ks[1], in_nodes, hid)
    w2, b2 = lin(ks[2], ks[3], hid, hid)
    w3, b3 = lin(ks[4], ks[5], hid, hid)
    w4, b4 = lin(ks[6], ks[7], hid, out_nodes)
    return dict(w1=w1, b1=b1, w2=w2, b2=b2, w3=w3, b3=b3, w4=w4, b4=b4)


def reference_forward(x, p):
    # Pure-JAX f32 reference with PyTorch-layout weights (dropout = identity in eval).
    h = jnp.maximum(x @ p["w1"].T + p["b1"], 0.0)
    h = jnp.maximum(h @ p["w2"].T + p["b2"], 0.0)
    h = jnp.maximum(h @ p["w3"].T + p["b3"], 0.0)
    return h @ p["w4"].T + p["b4"]


if __name__ == "__main__":
    key = jax.random.PRNGKey(0)
    kx, kp = jax.random.split(key)

    B, In_nodes, Hid, Out_nodes = 8, 16, 32, 8
    x = jax.random.normal(kx, (B, In_nodes), jnp.float32)
    params = init_params(kp, In_nodes, Hid, Out_nodes)

    prepped = prepare_params(params)          # one-time: transpose to (in, out)
    y = learn_kappa_layers3_forward(x, prepped)
    y = jax.block_until_ready(y)

    y_ref = reference_forward(x, params)
    assert y.shape == (B, Out_nodes)
    # f32 end-to-end; tolerance only covers MXU f32 matmul rounding.
    assert jnp.allclose(y, y_ref, atol=2e-2, rtol=2e-2), float(jnp.max(jnp.abs(y - y_ref)))

    print("KERNEL_OK")
</pallas_src>

<mosaic_0001>
module attributes {stable_mosaic.version = 11 : i64} {
  func.func @mlp_kernel(%arg0: i32, %arg1: memref<16x16xf32, #tpu.memory_space<vmem>>, %arg2: memref<16x32xf32, #tpu.memory_space<vmem>>, %arg3: memref<1x32xf32, #tpu.memory_space<vmem>>, %arg4: memref<32x32xf32, #tpu.memory_space<vmem>>, %arg5: memref<1x32xf32, #tpu.memory_space<vmem>>, %arg6: memref<32x32xf32, #tpu.memory_space<vmem>>, %arg7: memref<1x32xf32, #tpu.memory_space<vmem>>, %arg8: memref<32x8xf32, #tpu.memory_space<vmem>>, %arg9: memref<1x8xf32, #tpu.memory_space<vmem>>, %arg10: memref<16x8xf32, #tpu.memory_space<vmem>>) attributes {dimension_semantics = [#tpu.dimension_semantics<parallel>], iteration_bounds = array<i64: 1>, scalar_prefetch = 0 : i64, scratch_operands = 0 : i64, tpu.core_type = #tpu.core_type<tc>, window_params = [{transform_indices = @transform_0, window_bounds = array<i64: 16, 16>}, {pipeline_mode = #tpu.pipeline_mode<synchronous>, transform_indices = @transform_1, window_bounds = array<i64: 16, 32>}, {pipeline_mode = #tpu.pipeline_mode<synchronous>, transform_indices = @transform_2, window_bounds = array<i64: 1, 32>}, {pipeline_mode = #tpu.pipeline_mode<synchronous>, transform_indices = @transform_3, window_bounds = array<i64: 32, 32>}, {pipeline_mode = #tpu.pipeline_mode<synchronous>, transform_indices = @transform_4, window_bounds = array<i64: 1, 32>}, {pipeline_mode = #tpu.pipeline_mode<synchronous>, transform_indices = @transform_5, window_bounds = array<i64: 32, 32>}, {pipeline_mode = #tpu.pipeline_mode<synchronous>, transform_indices = @transform_6, window_bounds = array<i64: 1, 32>}, {pipeline_mode = #tpu.pipeline_mode<synchronous>, transform_indices = @transform_7, window_bounds = array<i64: 32, 8>}, {pipeline_mode = #tpu.pipeline_mode<synchronous>, transform_indices = @transform_8, window_bounds = array<i64: 1, 8>}, {transform_indices = @transform_9, window_bounds = array<i64: 16, 8>}]} {
    %c0 = arith.constant 0 : index
    %c0_0 = arith.constant 0 : index
    %0 = vector.load %arg1[%c0, %c0_0] : memref<16x16xf32, #tpu.memory_space<vmem>>, vector<16x16xf32>
    %c0_1 = arith.constant 0 : index
    %c0_2 = arith.constant 0 : index
    %1 = vector.load %arg2[%c0_1, %c0_2] : memref<16x32xf32, #tpu.memory_space<vmem>>, vector<16x32xf32>
    %cst = arith.constant dense<0.000000e+00> : vector<16x32xf32>
    %2 = tpu.matmul %0, %1, %cst {dimension_numbers = #tpu.dot_dimension_numbers<[1], [0], [0], [1], [0, 0, 1, 1], [], []>} : vector<16x16xf32>, vector<16x32xf32>, vector<16x32xf32> -> vector<16x32xf32>
    %c0_3 = arith.constant 0 : index
    %c0_4 = arith.constant 0 : index
    %3 = vector.load %arg3[%c0_3, %c0_4] : memref<1x32xf32, #tpu.memory_space<vmem>>, vector<1x32xf32>
    %4 = vector.broadcast %3 : vector<1x32xf32> to vector<16x32xf32>
    %5 = arith.addf %2, %4 : vector<16x32xf32>
    %cst_5 = arith.constant 0.000000e+00 : f32
    %6 = vector.broadcast %cst_5 : f32 to vector<16x32xf32>
    %7 = arith.maximumf %5, %6 : vector<16x32xf32>
    %c0_6 = arith.constant 0 : index
    %c0_7 = arith.constant 0 : index
    %8 = vector.load %arg4[%c0_6, %c0_7] : memref<32x32xf32, #tpu.memory_space<vmem>>, vector<32x32xf32>
    %cst_8 = arith.constant dense<0.000000e+00> : vector<16x32xf32>
    %9 = tpu.matmul %7, %8, %cst_8 {dimension_numbers = #tpu.dot_dimension_numbers<[1], [0], [0], [1], [0, 0, 1, 1], [], []>} : vector<16x32xf32>, vector<32x32xf32>, vector<16x32xf32> -> vector<16x32xf32>
    %c0_9 = arith.constant 0 : index
    %c0_10 = arith.constant 0 : index
    %10 = vector.load %arg5[%c0_9, %c0_10] : memref<1x32xf32, #tpu.memory_space<vmem>>, vector<1x32xf32>
    %11 = vector.broadcast %10 : vector<1x32xf32> to vector<16x32xf32>
    %12 = arith.addf %9, %11 : vector<16x32xf32>
    %cst_11 = arith.constant 0.000000e+00 : f32
    %13 = vector.broadcast %cst_11 : f32 to vector<16x32xf32>
    %14 = arith.maximumf %12, %13 : vector<16x32xf32>
    %c0_12 = arith.constant 0 : index
    %c0_13 = arith.constant 0 : index
    %15 = vector.load %arg6[%c0_12, %c0_13] : memref<32x32xf32, #tpu.memory_space<vmem>>, vector<32x32xf32>
    %cst_14 = arith.constant dense<0.000000e+00> : vector<16x32xf32>
    %16 = tpu.matmul %14, %15, %cst_14 {dimension_numbers = #tpu.dot_dimension_numbers<[1], [0], [0], [1], [0, 0, 1, 1], [], []>} : vector<16x32xf32>, vector<32x32xf32>, vector<16x32xf32> -> vector<16x32xf32>
    %c0_15 = arith.constant 0 : index
    %c0_16 = arith.constant 0 : index
    %17 = vector.load %arg7[%c0_15, %c0_16] : memref<1x32xf32, #tpu.memory_space<vmem>>, vector<1x32xf32>
    %18 = vector.broadcast %17 : vector<1x32xf32> to vector<16x32xf32>
    %19 = arith.addf %16, %18 : vector<16x32xf32>
    %cst_17 = arith.constant 0.000000e+00 : f32
    %20 = vector.broadcast %cst_17 : f32 to vector<16x32xf32>
    %21 = arith.maximumf %19, %20 : vector<16x32xf32>
    %c0_18 = arith.constant 0 : index
    %c0_19 = arith.constant 0 : index
    %22 = vector.load %arg8[%c0_18, %c0_19] : memref<32x8xf32, #tpu.memory_space<vmem>>, vector<32x8xf32>
    %cst_20 = arith.constant dense<0.000000e+00> : vector<16x8xf32>
    %23 = tpu.matmul %21, %22, %cst_20 {dimension_numbers = #tpu.dot_dimension_numbers<[1], [0], [0], [1], [0, 0, 1, 1], [], []>} : vector<16x32xf32>, vector<32x8xf32>, vector<16x8xf32> -> vector<16x8xf32>
    %c0_21 = arith.constant 0 : index
    %c0_22 = arith.constant 0 : index
    %24 = vector.load %arg9[%c0_21, %c0_22] : memref<1x8xf32, #tpu.memory_space<vmem>>, vector<1x8xf32>
    %25 = vector.broadcast %24 : vector<1x8xf32> to vector<16x8xf32>
    %26 = arith.addf %23, %25 : vector<16x8xf32>
    %c0_23 = arith.constant 0 : index
    %c0_24 = arith.constant 0 : index
    %27 = vector.load %arg10[%c0_23, %c0_24] : memref<16x8xf32, #tpu.memory_space<vmem>>, vector<16x8xf32>
    tpu.vector_store %arg10[%c0_23, %c0_24], %26 {strides = array<i32>} : memref<16x8xf32, #tpu.memory_space<vmem>>, vector<16x8xf32>,
    return
  }
  func.func @transform_0(%arg0: i32) -> (i32, i32) {
    %c0_i32 = arith.constant 0 : i32
    %c0_i32_0 = arith.constant 0 : i32
    return %arg0, %c0_i32 : i32, i32
  }
  func.func @transform_1(%arg0: i32) -> (i32, i32) {
    %c0_i32 = arith.constant 0 : i32
    %c0_i32_0 = arith.constant 0 : i32
    %c0_i32_1 = arith.constant 0 : i32
    return %c0_i32, %c0_i32_0 : i32, i32
  }
  func.func @transform_2(%arg0: i32) -> (i32, i32) {
    %c0_i32 = arith.constant 0 : i32
    %c0_i32_0 = arith.constant 0 : i32
    %c0_i32_1 = arith.constant 0 : i32
    return %c0_i32, %c0_i32_0 : i32, i32
  }
  func.func @transform_3(%arg0: i32) -> (i32, i32) {
    %c0_i32 = arith.constant 0 : i32
    %c0_i32_0 = arith.constant 0 : i32
    %c0_i32_1 = arith.constant 0 : i32
    return %c0_i32, %c0_i32_0 : i32, i32
  }
  func.func @transform_4(%arg0: i32) -> (i32, i32) {
    %c0_i32 = arith.constant 0 : i32
    %c0_i32_0 = arith.constant 0 : i32
    %c0_i32_1 = arith.constant 0 : i32
    return %c0_i32, %c0_i32_0 : i32, i32
  }
  func.func @transform_5(%arg0: i32) -> (i32, i32) {
    %c0_i32 = arith.constant 0 : i32
    %c0_i32_0 = arith.constant 0 : i32
    %c0_i32_1 = arith.constant 0 : i32
    return %c0_i32, %c0_i32_0 : i32, i32
  }
  func.func @transform_6(%arg0: i32) -> (i32, i32) {
    %c0_i32 = arith.constant 0 : i32
    %c0_i32_0 = arith.constant 0 : i32
    %c0_i32_1 = arith.constant 0 : i32
    return %c0_i32, %c0_i32_0 : i32, i32
  }
  func.func @transform_7(%arg0: i32) -> (i32, i32) {
    %c0_i32 = arith.constant 0 : i32
    %c0_i32_0 = arith.constant 0 : i32
    %c0_i32_1 = arith.constant 0 : i32
    return %c0_i32, %c0_i32_0 : i32, i32
  }
  func.func @transform_8(%arg0: i32) -> (i32, i32) {
    %c0_i32 = arith.constant 0 : i32
    %c0_i32_0 = arith.constant 0 : i32
    %c0_i32_1 = arith.constant 0 : i32
    return %c0_i32, %c0_i32_0 : i32, i32
  }
  func.func @transform_9(%arg0: i32) -> (i32, i32) {
    %c0_i32 = arith.constant 0 : i32
    %c0_i32_0 = arith.constant 0 : i32
    return %arg0, %c0_i32 : i32, i32
  }
}

</mosaic_0001>

<bundles_post_ra>
// kernel: tpu_custom_call.1
= control target key start
LH: loop header
LB: loop body
LE: loop exit
PB: predicated region body
PF: predicated region fallthrough
CT: control target
= control target key end

     0   :  { %14 = vsyncpa [#allocation3], 0  ;;  %s731_s0 = inlined_call_operand.vmem [shape: f32[16,16], index: 0, kind: input, shape index: {}]   ;;  %s732_s1 = inlined_call_operand.hbm [shape: f32[16,32], index: 1, kind: input, shape index: {}]   ;;  %s733_s2 = inlined_call_operand.vmem [shape: f32[1,32], index: 2, kind: input, shape index: {}]   ;;  %s734_s3 = inlined_call_operand.vmem [shape: f32[32,32], index: 3, kind: input, shape index: {}]   ;;  %s735_s4 = inlined_call_operand.vmem [shape: f32[1,32], index: 4, kind: input, shape index: {}]   ;;  %s736_s5 = inlined_call_operand.hbm [shape: f32[32,32], index: 5, kind: input, shape index: {}]   ;;  %s737_s6 = inlined_call_operand.vmem [shape: f32[1,32], index: 6, kind: input, shape index: {}]   ;;  %s738_s7 = inlined_call_operand.vmem [shape: f32[32,8], index: 7, kind: input, shape index: {}]   ;;  %s739_s8 = inlined_call_operand.vmem [shape: f32[1,8], index: 8, kind: input, shape index: {}]   ;;  %s740_s9 = inlined_call_operand.vmem [shape: f32[16,8], index: 9, kind: output, shape index: {}]  }
   0x1   :  { %15 = vsyncpa [#allocation5], 0  ;;  %s599_s30 = smov [#allocation2]   ;;  %s551_s13 = scalar_lea.hbm %s732_s1, 256 }
   0x2   :  { %s23_s10 = sshll.u32 %s599_s30, 4  ;;  %p552_p0 = scmp.ne.s32.totalorder %s732_s1, %s551_s13  ;;  %s24_s10 = int_to_ptr.vmem [resolvable:$true] %s23_s10 }
   0x3   :  { %p555_p1 = scmp.lt.u32.totalorder %s551_s13, %s732_s1 }
   0x5   :  { %p557_p2 = pnand %p555_p1, %p552_p0 }
   0x7   :  { %560 = shalt.err (!%p557_p2)
}
   0x8   :  { %s561_s18 = scalar_lea.vmem %s24_s10, 256  ;;  %p566_p4 = scmp.lt.s32.totalorder %s24_s10, %s24_s10 }
   0x9   :  { %p562_p3 = scmp.ne.s32.totalorder %s24_s10, %s561_s18  ;;  %p567_p5 = scmp.lt.s32.totalorder %s561_s18, %s561_s18 }
   0xb   :  { %p568_p6 = por %p567_p5, %p566_p4 }
   0xd   :  { %p569_p7 = pnand %p568_p6, %p562_p3 }
   0xf   :  { %572 = shalt.err (!%p569_p7)
}
  0x10   :  { %s600_s19 = smov 128   ;;  %s601_s20 = smov 8  }
  0x11   :  { %29 = dma.hbm_to_vmem [thread:$0]  %s732_s1, 256, %s24_s10, [#allocation3], %s600_s19, %s600_s19, %s601_s20  }
  0x12   :  { %s602_s23 = smov [#allocation4]   ;;  %s573_s27 = scalar_lea.hbm %s736_s5, 512 }
  0x13   :  { %s41_s24 = sshll.u32 %s602_s23, 4  ;;  %p574_p8 = scmp.ne.s32.totalorder %s736_s5, %s573_s27  ;;  %s42_s24 = int_to_ptr.vmem [resolvable:$true] %s41_s24 }
  0x14   :  { %p577_p9 = scmp.lt.u32.totalorder %s573_s27, %s736_s5 }
  0x16   :  { %p579_p10 = pnand %p577_p9, %p574_p8 }
  0x18   :  { %582 = shalt.err (!%p579_p10)
}
  0x19   :  { %s583_s12 = scalar_lea.vmem %s42_s24, 512  ;;  %p588_p12 = scmp.lt.s32.totalorder %s42_s24, %s42_s24 }
  0x1a   :  { %p584_p11 = scmp.ne.s32.totalorder %s42_s24, %s583_s12  ;;  %p589_p13 = scmp.lt.s32.totalorder %s583_s12, %s583_s12 }
  0x1c   :  { %p590_p0 = por %p589_p13, %p588_p12 }
  0x1e   :  { %p591_p1 = pnand %p590_p0, %p584_p11 }
  0x20   :  { %594 = shalt.err (!%p591_p1)
}
  0x21   :  { %47 = dma.hbm_to_vmem [thread:$0]  %s736_s5, 512, %s42_s24, [#allocation5], %s600_s19, %s600_s19, %s601_s20  }
  0x22   :  { %595 = dma.done.wait [#allocation3], 256  }
  0x23   :  { %596 = vsyncadd [#allocation3], 4294967040 }
  0x24   :  { %597 = dma.done.wait [#allocation5], 512  }
  0x25   :  { %598 = vsyncadd [#allocation5], 4294966784  ;;  %vm71_vm0 = vcmask 130048   ;;  %v62_v0 = vld [vmem:[#allocation2] sm:$0xff]  ;;  %v63_v1 = vld [vmem:[#allocation2 + $0x8] sm:$0xff]  ;;  %vm166_vm1 = vcmask 261120  }
  0x26   :  { %v60_v2 = vld [vmem:[%s731_s0] sm:$0xff]  ;;  %v519_v3 = vpack.c.bf16 %v63_v1, %v62_v0  ;;  %v156_v5 = vld [vmem:[%s734_s3 + $0x8] sm:$0xff]  ;;  %v157_v8 = vld [vmem:[%s734_s3 + $0x10] sm:$0xff]  ;;  %vm436_vm2 = vcmask 64512  }
  0x27   :  { %483 = vmatprep.mubr.msk.f32.mxu0 %vm71_vm0, %v60_v2  ;;  %v155_v4 = vld [vmem:[%s734_s3] sm:$0xff]  ;;  %v61_v7 = vld [vmem:[%s731_s0 + $0x8] sm:$0xff]  ;;  %v158_v9 = vld [vmem:[%s734_s3 + $0x18] sm:$0xff] }
  0x28   :  { %v523_v6 = vpack.c.bf16 %v156_v5, %v155_v4  ;;  %520 = vmatprep.subr.bf16.mxu0 %v519_v3  ;;  %v527_v10 = vpack.c.bf16 %v158_v9, %v157_v8  ;;  %v250_v11 = vld [vmem:[#allocation4] sm:$0xff]  ;;  %v251_v12 = vld [vmem:[#allocation4 + $0x8] sm:$0xff]  ;;  %v445_v14 = vld [vmem:[%s733_s2] ss:$0 sm:$0xff] }
  0x29   :  { %522 = vmatpush3.bf16.msra.mxu0 %v519_v3  ;;  %v531_v13 = vpack.c.bf16 %v251_v12, %v250_v11  ;;  %v252_v21 = vld [vmem:[#allocation4 + $0x10] sm:$0xff]  ;;  %v253_v22 = vld [vmem:[#allocation4 + $0x18] sm:$0xff]  ;;  %v346_v34 = vld [vmem:[%s738_s7 + $0x10] sm:$0xff] }
  0x2a   :  { %524 = vmatprep.subr.bf16.mxu1 %v523_v6  ;;  %v535_v23 = vpack.c.bf16 %v253_v22, %v252_v21  ;;  %v344_v24 = vld [vmem:[%s738_s7] sm:$0xff]  ;;  %v345_v25 = vld [vmem:[%s738_s7 + $0x8] sm:$0xff]  ;;  %v347_v35 = vld [vmem:[%s738_s7 + $0x18] sm:$0xff] }
  0x2b   :  { %526 = vmatpush3.bf16.msra.mxu1 %v523_v6  ;;  %532 = vmatprep.subr.bf16.mxu0 %v531_v13  ;;  %v539_v26 = vpack.c.bf16 %v345_v25, %v344_v24  ;;  %v448_v27 = vld [vmem:[%s735_s4] ss:$0 sm:$0xff]  ;;  %v543_v36 = vpack.c.bf16 %v347_v35, %v346_v34 }
  0x2c   :  { %484 = vmatmul.mubr.msk.f32.vlgmr.msra.gmra.mrb[0].mxu0 %vm71_vm0, %v61_v7  ;;  %528 = vmatprep.subr.bf16.mxu1 %v527_v10  ;;  %v451_v37 = vld [vmem:[%s737_s6] ss:$0 sm:$0xff] }
  0x2d   :  { %534 = vmatpush3.bf16.msra.mxu0 %v531_v13  ;;  %v454_v44 = vld [vmem:[%s739_s8] ss:$0 sm:$0xff] }
  0x2e   :  { %536 = vmatprep.subr.bf16.mxu0 %v535_v23 }
  0x2f   :  { %530 = vmatpush3.bf16.msra.mxu1 %v527_v10 }
  0x30   :  { %540 = vmatprep.subr.bf16.mxu1 %v539_v26 }
  0x31   :  { %538 = vmatpush3.bf16.msra.mxu0 %v535_v23 }
  0xff   :  { %v485_v15 = vpop.f32.mrb[0].mxu0 }
 0x100   :  { %v150_v16 = vadd.f32 %v485_v15, %v445_v14  ;;  %v144_v17 = vpop.f32.mrb[1].mxu0 }
 0x101   :  { %v145_v18 = vadd.f32 %v445_v14, %v144_v17 }
 0x102   :  { %v154_v20 = vmax.f32 %v150_v16, 0.0 }
 0x103   :  { %v153_v19 = vmax.f32 %v145_v18, 0.0 }
 0x105   :  { %494 = vmatprep.mubr.msk.f32.mxu1 %vm166_vm1, %v153_v19 }
 0x106   :  { %495 = vmatmul.mubr.msk.f32.vlgmr.msra.gmra.mrb[0].mxu1 %vm166_vm1, %v154_v20 }
 0x107   :  { %542 = vmatpush3.bf16.msra.mxu1 %v539_v26 }
 0x108   :  { %544 = vmatprep.subr.bf16.mxu1 %v543_v36 }
 0x10b   :  { %546 = vmatpush3.bf16.msra.mxu1 %v543_v36 }
 0x1d9   :  { %v496_v28 = vpop.f32.mrb[0].mxu1 }
 0x1da   :  { %v245_v29 = vadd.f32 %v496_v28, %v448_v27  ;;  %v239_v30 = vpop.f32.mrb[1].mxu1 }
 0x1db   :  { %v240_v31 = vadd.f32 %v448_v27, %v239_v30 }
 0x1dc   :  { %v249_v33 = vmax.f32 %v245_v29, 0.0 }
 0x1dd   :  { %v248_v32 = vmax.f32 %v240_v31, 0.0 }
 0x1df   :  { %505 = vmatprep.mubr.msk.f32.mxu0 %vm166_vm1, %v248_v32 }
 0x1e0   :  { %506 = vmatmul.mubr.msk.f32.vlgmr.msra.gmra.mrb[2].mxu0 %vm166_vm1, %v249_v33 }
 0x2b3   :  { %v507_v38 = vpop.f32.mrb[2].mxu0 }
 0x2b4   :  { %v339_v39 = vadd.f32 %v507_v38, %v451_v37  ;;  %v333_v40 = vpop.f32.mrb[3].mxu0 }
 0x2b5   :  { %v334_v41 = vadd.f32 %v451_v37, %v333_v40 }
 0x2b6   :  { %v343_v43 = vmax.f32 %v339_v39, 0.0 }
 0x2b7   :  { %v342_v42 = vmax.f32 %v334_v41, 0.0 }
 0x2b9   :  { %516 = vmatprep.mubr.msk.f32.mxu1 %vm166_vm1, %v342_v42 }
 0x2ba   :  { %517 = vmatmul.mubr.msk.f32.vlgmr.msra.gmra.mrb[2].mxu1 %vm166_vm1, %v343_v43 }
 0x38d   :  { %v518_v45 = vpop.f32.mrb[2].mxu1 }
 0x38e   :  { %v433_v46 = vadd.f32 %v518_v45, %v454_v44  ;;  %v427_v47 = vpop.f32.mrb[3].mxu1 }
 0x38f   :  { %v428_v48 = vadd.f32 %v454_v44, %v427_v47 }
 0x390   :  { %438 = vst.msk [vmem:[%s740_s9 + $0x8] sm:$0xff] %vm436_vm2, %v433_v46 }
 0x391   :  { %437 = vst.msk [vmem:[%s740_s9] sm:$0xff] %vm436_vm2, %v428_v48 }
 0x392   :  { %443 = vsyncpa [#allocation3], 1 }
 0x393   :  { %444 = vsyncpa [#allocation5], 1 }

</bundles_post_ra>
